<compile_context>
chip_gen: v6e
topology: v6e:2x2x1
jax: 0.10.0
libtpu: 0.0.40
codegen_flags: <defaults>
</compile_context>

<pallas_src>
import functools

import numpy as np
import jax
import jax.numpy as jnp
from jax.experimental import pallas as pl
from jax.experimental.pallas import tpu as pltpu


# ---------------------------------------------------------------------------
# Kernels
# ---------------------------------------------------------------------------

def _scale_norm_kernel(g_ref, x_ref, o_ref, *, scale, eps):
    """Plain path: one logical row per tile row.  x_ref/o_ref: (R, D)."""
    x = x_ref[...].astype(jnp.float32)
    sq = jnp.sum(x * x, axis=-1, keepdims=True)           # (R, 1)
    norm = jnp.sqrt(sq) * scale
    clamped = jnp.maximum(norm, eps)                       # clamp(min=eps)
    g = g_ref[0].astype(jnp.float32)
    # per-row scalar multiply instead of a per-element divide
    mult = g * pl.reciprocal(clamped, approx=False)        # (R, 1)
    o_ref[...] = (x * mult).astype(o_ref.dtype)


def _scale_norm_packed_kernel(g_ref, seg_ref, x_ref, o_ref, *, scale, eps):
    """Lane-dense path for D < 128: P = 128 // D rows packed per lane-row.

    x_ref/o_ref: (R, 128).  seg_ref: (128, 128) block-diagonal 0/1 matrix with
    DxD blocks of ones (bf16).  (x*x) @ seg gives, for every lane, the
    sum-of-squares of the D-wide segment that lane belongs to, already
    broadcast across the segment.  The squared tile is split into bf16
    hi/lo parts so the bf16 MXU matmul (f32 accumulation) reconstructs the
    f32 sum to ~1e-6 relative accuracy without relying on f32-matmul
    precision flags.
    """
    x = x_ref[...].astype(jnp.float32)                     # (R, 128)
    sq = x * x
    sq_hi = sq.astype(jnp.bfloat16)
    sq_lo = (sq - sq_hi.astype(jnp.float32)).astype(jnp.bfloat16)
    seg = seg_ref[...]                                     # (128, 128) bf16, 0/1
    ss = (jnp.dot(sq_hi, seg, preferred_element_type=jnp.float32) +
          jnp.dot(sq_lo, seg, preferred_element_type=jnp.float32))  # (R, 128)
    norm = jnp.sqrt(ss) * scale
    clamped = jnp.maximum(norm, eps)
    g = g_ref[0].astype(jnp.float32)
    mult = g * pl.reciprocal(clamped, approx=False)
    o_ref[...] = (x * mult).astype(o_ref.dtype)


# ---------------------------------------------------------------------------
# Wrapper
# ---------------------------------------------------------------------------

_VMEM_TILE_BUDGET_BYTES = 12 * 1024 * 1024   # buffered in/out tiles + f32 temps
_VMEM_LIMIT_BYTES = 32 * 1024 * 1024         # raise v5e's 16 MiB default; fits v7x


def _pick_block_rows(n_rows, row_width, itemsize):
    """Largest row tile keeping double-buffered in/out + f32 temps in budget."""
    # in + out, double-buffered, plus ~2 f32-sized temporaries of the tile.
    bytes_per_row = row_width * (2 * 2 * itemsize + 2 * 4)
    rows = max(int(_VMEM_TILE_BUDGET_BYTES // bytes_per_row), 1)
    if rows >= n_rows:
        return n_rows                         # block == full dim (always legal)
    align = 8 if itemsize >= 4 else (16 if itemsize == 2 else 32)
    # keep >= ~8 grid steps so the "parallel" row axis can shard across cores
    rows = min(rows, pl.cdiv(n_rows, 8))
    rows = max((rows // align) * align, align)
    return min(rows, n_rows)


def scale_norm(x, g, *, eps=1e-5):
    """ScaleNorm forward. x: (..., D); g: (1,) scalar gain."""
    orig_shape = x.shape
    D = orig_shape[-1]
    x2 = x.reshape(-1, D)
    N = x2.shape[0]
    scale = float(D) ** (-0.5)
    itemsize = jnp.dtype(x.dtype).itemsize

    compiler_params = pltpu.CompilerParams(
        dimension_semantics=("parallel",),
        vmem_limit_bytes=_VMEM_LIMIT_BYTES,
    )
    cost = pl.CostEstimate(
        flops=3 * N * D,
        transcendentals=2 * N,                # sqrt + reciprocal per row
        bytes_accessed=2 * N * D * itemsize,
    )

    lane_pack = 128 // D if (D < 128 and 128 % D == 0) else 1
    if lane_pack > 1 and N % lane_pack == 0:
        # ---- lane-dense packed path (D < 128): pack P rows per 128-lane row.
        P = lane_pack
        Np = N // P
        xp = x2.reshape(Np, 128)              # free: row-major contiguity
        seg = jnp.asarray(
            np.kron(np.eye(P, dtype=np.float32), np.ones((D, D), np.float32)),
            dtype=jnp.bfloat16)
        block_rows = _pick_block_rows(Np, 128, itemsize)
        grid = (pl.cdiv(Np, block_rows),)
        out = pl.pallas_call(
            functools.partial(_scale_norm_packed_kernel, scale=scale, eps=eps),
            out_shape=jax.ShapeDtypeStruct((Np, 128), x.dtype),
            grid=grid,
            in_specs=[
                pl.BlockSpec(memory_space=pltpu.MemorySpace.SMEM),      # g
                pl.BlockSpec((128, 128), lambda i: (0, 0)),             # seg
                pl.BlockSpec((block_rows, 128), lambda i: (i, 0)),      # x tile
            ],
            out_specs=pl.BlockSpec((block_rows, 128), lambda i: (i, 0)),
            compiler_params=compiler_params,
            cost_estimate=cost,
        )(g, seg, xp)
        return out.reshape(orig_shape)

    # ---- plain path: feature dim on lanes, one logical row per tile row.
    block_rows = _pick_block_rows(N, D, itemsize)
    grid = (pl.cdiv(N, block_rows),)
    out = pl.pallas_call(
        functools.partial(_scale_norm_kernel, scale=scale, eps=eps),
        out_shape=jax.ShapeDtypeStruct((N, D), x.dtype),
        grid=grid,
        in_specs=[
            pl.BlockSpec(memory_space=pltpu.MemorySpace.SMEM),          # g
            pl.BlockSpec((block_rows, D), lambda i: (i, 0)),
        ],
        out_specs=pl.BlockSpec((block_rows, D), lambda i: (i, 0)),
        compiler_params=compiler_params,
        cost_estimate=cost,
    )(g, x2)
    return out.reshape(orig_shape)


def scale_norm_ref(x, g, eps=1e-5):
    """Pure-JAX reference mirroring the PyTorch module."""
    D = x.shape[-1]
    scale = float(D) ** (-0.5)
    norm = jnp.linalg.norm(x, axis=-1, keepdims=True) * scale
    return x / jnp.maximum(norm, eps) * g[0]


if __name__ == "__main__":
    key = jax.random.PRNGKey(0)

    # Shapes consistent with module usage: (batch, seq, dim)
    B, T, D = 2, 8, 32
    x = jax.random.normal(key, (B, T, D), dtype=jnp.float32)
    g = jnp.ones((1,), dtype=jnp.float32)   # nn.Parameter(torch.ones(1))

    out = jax.block_until_ready(scale_norm(x, g))
    ref = scale_norm_ref(x, g)
    assert out.shape == x.shape
    # Packed (lane-dense) path uses a bf16-split MXU segment reduction
    # (~1e-6 relative accuracy); validate with a small slack.
    assert jnp.allclose(out, ref, atol=1e-4, rtol=1e-4), "packed path mismatch"

    # Also exercise the plain path (D >= 128) with a tight tolerance.
    x2 = jax.random.normal(jax.random.PRNGKey(1), (2, 8, 256), dtype=jnp.float32)
    out2 = jax.block_until_ready(scale_norm(x2, g))
    ref2 = scale_norm_ref(x2, g)
    assert jnp.allclose(out2, ref2, atol=1e-5, rtol=1e-5), "plain path mismatch"

    print("KERNEL_OK")
</pallas_src>

<mosaic_0001>
module attributes {stable_mosaic.version = 11 : i64} {
  func.func @_scale_norm_packed_kernel(%arg0: i32, %arg1: memref<1xf32, #tpu.memory_space<smem>>, %arg2: memref<128x128xbf16, #tpu.memory_space<vmem>>, %arg3: memref<4x128xf32, #tpu.memory_space<vmem>>, %arg4: memref<4x128xf32, #tpu.memory_space<vmem>>) attributes {dimension_semantics = [#tpu.dimension_semantics<parallel>], iteration_bounds = array<i64: 1>, scalar_prefetch = 0 : i64, scratch_operands = 0 : i64, tpu.core_type = #tpu.core_type<tc>, window_params = [{transform_indices = @transform_0, window_bounds = array<i64: 1>}, {pipeline_mode = #tpu.pipeline_mode<synchronous>, transform_indices = @transform_1, window_bounds = array<i64: 128, 128>}, {transform_indices = @transform_2, window_bounds = array<i64: 4, 128>}, {transform_indices = @transform_3, window_bounds = array<i64: 4, 128>}]} {
    %c0 = arith.constant 0 : index
    %c0_0 = arith.constant 0 : index
    %0 = vector.load %arg3[%c0, %c0_0] : memref<4x128xf32, #tpu.memory_space<vmem>>, vector<4x128xf32>
    %1 = arith.mulf %0, %0 : vector<4x128xf32>
    %2 = arith.truncf %1 : vector<4x128xf32> to vector<4x128xbf16>
    %3 = arith.extf %2 : vector<4x128xbf16> to vector<4x128xf32>
    %4 = arith.subf %1, %3 : vector<4x128xf32>
    %5 = arith.truncf %4 : vector<4x128xf32> to vector<4x128xbf16>
    %c0_1 = arith.constant 0 : index
    %c0_2 = arith.constant 0 : index
    %6 = vector.load %arg2[%c0_1, %c0_2] : memref<128x128xbf16, #tpu.memory_space<vmem>>, vector<128x128xbf16>
    %cst = arith.constant dense<0.000000e+00> : vector<4x128xf32>
    %7 = tpu.matmul %2, %6, %cst {dimension_numbers = #tpu.dot_dimension_numbers<[1], [0], [0], [1], [0, 0, 1, 1], [], []>} : vector<4x128xbf16>, vector<128x128xbf16>, vector<4x128xf32> -> vector<4x128xf32>
    %cst_3 = arith.constant dense<0.000000e+00> : vector<4x128xf32>
    %8 = tpu.matmul %5, %6, %cst_3 {dimension_numbers = #tpu.dot_dimension_numbers<[1], [0], [0], [1], [0, 0, 1, 1], [], []>} : vector<4x128xbf16>, vector<128x128xbf16>, vector<4x128xf32> -> vector<4x128xf32>
    %9 = arith.addf %7, %8 : vector<4x128xf32>
    %10 = math.sqrt %9 : vector<4x128xf32>
    %cst_4 = arith.constant 0.176776692 : f32
    %11 = vector.broadcast %cst_4 : f32 to vector<4x128xf32>
    %12 = arith.mulf %10, %11 : vector<4x128xf32>
    %cst_5 = arith.constant 9.99999974E-6 : f32
    %13 = vector.broadcast %cst_5 : f32 to vector<4x128xf32>
    %14 = arith.maximumf %12, %13 : vector<4x128xf32>
    %c0_6 = arith.constant 0 : index
    %15 = memref.load %arg1[%c0_6] : memref<1xf32, #tpu.memory_space<smem>>
    %16 = tpu.reciprocal %14 : vector<4x128xf32> -> vector<4x128xf32>
    %17 = vector.broadcast %15 : f32 to vector<4x128xf32>
    %18 = arith.mulf %17, %16 : vector<4x128xf32>
    %19 = arith.mulf %0, %18 : vector<4x128xf32>
    %c0_7 = arith.constant 0 : index
    %c0_8 = arith.constant 0 : index
    %20 = vector.load %arg4[%c0_7, %c0_8] : memref<4x128xf32, #tpu.memory_space<vmem>>, vector<4x128xf32>
    tpu.vector_store %arg4[%c0_7, %c0_8], %19 {strides = array<i32>} : memref<4x128xf32, #tpu.memory_space<vmem>>, vector<4x128xf32>,
    return
  }
  func.func @transform_0(%arg0: i32) -> i32 {
    %c0_i32 = arith.constant 0 : i32
    %c0_i32_0 = arith.constant 0 : i32
    return %c0_i32 : i32
  }
  func.func @transform_1(%arg0: i32) -> (i32, i32) {
    %c0_i32 = arith.constant 0 : i32
    %c0_i32_0 = arith.constant 0 : i32
    %c0_i32_1 = arith.constant 0 : i32
    return %c0_i32, %c0_i32_0 : i32, i32
  }
  func.func @transform_2(%arg0: i32) -> (i32, i32) {
    %c0_i32 = arith.constant 0 : i32
    %c0_i32_0 = arith.constant 0 : i32
    return %arg0, %c0_i32 : i32, i32
  }
  func.func @transform_3(%arg0: i32) -> (i32, i32) {
    %c0_i32 = arith.constant 0 : i32
    %c0_i32_0 = arith.constant 0 : i32
    return %arg0, %c0_i32 : i32, i32
  }
}

</mosaic_0001>

<bundles_post_ra>
// kernel: tpu_custom_call.1
= control target key start
LH: loop header
LB: loop body
LE: loop exit
PB: predicated region body
PF: predicated region fallthrough
CT: control target
= control target key end

     0   :  { %9 = vsyncpa [#allocation4], 0  ;;  %s414_s0 = inlined_call_operand.<no memory space> [shape: f32[1], index: 0, kind: input, shape index: {}]   ;;  %s415_s1 = inlined_call_operand.hbm [shape: bf16[128,128], index: 1, kind: input, shape index: {}]   ;;  %s416_s2 = inlined_call_operand.hbm [shape: f32[4,128], index: 2, kind: input, shape index: {}]   ;;  %s417_s3 = inlined_call_operand.hbm [shape: f32[4,128], index: 3, kind: output, shape index: {}]  }
   0x1   :  { %10 = vsyncpa [#allocation7], 0 }
   0x2   :  { %11 = vsyncpa [#allocation5], 0  ;;  %s375_s12 = smov [#allocation3]  }
   0x3   :  { %s19_s13 = sshll.u32 %s375_s12, 4  ;;  %s20_s13 = int_to_ptr.vmem [resolvable:$true] %s19_s13 }
   0x4   :  { %s317_s14 = scalar_lea.vmem %s20_s13, 1024  ;;  %p322_p1 = scmp.lt.s32.totalorder %s20_s13, %s20_s13 }
   0x5   :  { %p318_p0 = scmp.ne.s32.totalorder %s20_s13, %s317_s14  ;;  %p323_p2 = scmp.lt.s32.totalorder %s317_s14, %s317_s14 }
   0x7   :  { %p324_p3 = por %p323_p2, %p322_p1 }
   0x9   :  { %p325_p4 = pnand %p324_p3, %p318_p0 }
   0xb   :  { %328 = shalt.err (!%p325_p4)
}
   0xc   :  { %s376_s15 = smov 64   ;;  %s377_s16 = smov 4  }
   0xd   :  { %25 = dma.hbm_to_vmem [thread:$0]  %s415_s1, 1024, %s20_s13, [#allocation4], %s376_s15, %s376_s15, %s377_s16  }
   0xe   :  { %s378_s19 = smov [#allocation6]  }
   0xf   :  { %s32_s20 = sshll.u32 %s378_s19, 4  ;;  %s33_s20 = int_to_ptr.vmem [resolvable:$true] %s32_s20 }
  0x10   :  { %s337_s21 = scalar_lea.vmem %s33_s20, 64  ;;  %p342_p6 = scmp.lt.s32.totalorder %s33_s20, %s33_s20 }
  0x11   :  { %p338_p5 = scmp.ne.s32.totalorder %s33_s20, %s337_s21  ;;  %p343_p7 = scmp.lt.s32.totalorder %s337_s21, %s337_s21 }
  0x13   :  { %p344_p8 = por %p343_p7, %p342_p6 }
  0x15   :  { %p345_p9 = pnand %p344_p8, %p338_p5 }
  0x17   :  { %348 = shalt.err (!%p345_p9)
}
  0x18   :  { %35 = dma.hbm_to_vmem [thread:$0]  %s416_s2, 64, %s33_s20, [#allocation7]  }
  0x19   :  { %369 = dma.done.wait [#allocation4], 1024  }
  0x1a   :  { %370 = vsyncadd [#allocation4], 4294966272 }
  0x1b   :  { %371 = dma.done.wait [#allocation7], 64  }
  0x1c   :  { %372 = vsyncadd [#allocation7], 4294967232  ;;  %v379_v0 = vmov 0.0   ;;  %vm380_vm0 = vmmov 0   ;;  %v297_v1 = vld [vmem:[#allocation3 + $0x38] sm:$0xff]   ;;  %v298_v2 = vld [vmem:[#allocation3 + $0x30] sm:$0xff]   ;;  %v204_v31 = vstv %s414_s0 }
  0x1d   :  { %250 = vmatprep.subr.bf16.mxu0 %v379_v0  ;;  %270 = vmatprep.subr.bf16.mxu1 %v379_v0  ;;  %v299_v3 = vld [vmem:[#allocation3 + $0x28] sm:$0xff]   ;;  %v300_v4 = vld [vmem:[#allocation3 + $0x20] sm:$0xff]   ;;  %v301_v7 = vld [vmem:[#allocation3 + $0x18] sm:$0xff]   ;;  %s381_s24 = smov [#allocation8]  }
  0x1e   :  { %266 = vmatprep.mubr.msk.bf16.mxu0 %vm380_vm0, %v379_v0  ;;  %286 = vmatprep.mubr.msk.bf16.mxu1 %vm380_vm0, %v379_v0  ;;  %v43_v5 = vld [vmem:[#allocation6] sm:$0xf]  ;;  %v302_v9 = vld [vmem:[#allocation3 + $0x10] sm:$0xff]   ;;  %v303_v11 = vld [vmem:[#allocation3 + $0x8] sm:$0xff]   ;;  %s214_s25 = sshll.u32 %s381_s24, 4  ;;  %s215_s25 = int_to_ptr.vmem [resolvable:$true] %s214_s25 }
  0x1f   :  { %251 = vmatpush3.bf16.msra.mxu0 %v297_v1  ;;  %271 = vmatpush3.bf16.msra.mxu1 %v297_v1  ;;  %v44_v6 = vmul.f32 %v43_v5, %v43_v5  ;;  %v304_v13 = vld [vmem:[#allocation3] sm:$0xff]   ;;  %s349_s26 = scalar_lea.vmem %s215_s25, 64  ;;  %p354_p11 = scmp.lt.s32.totalorder %s215_s25, %s215_s25 }
  0x20   :  { %252 = vmatprep.subr.bf16.mxu0 %v379_v0  ;;  %272 = vmatprep.subr.bf16.mxu1 %v379_v0  ;;  %p350_p10 = scmp.ne.s32.totalorder %s215_s25, %s349_s26  ;;  %p355_p12 = scmp.lt.s32.totalorder %s349_s26, %s349_s26 }
  0x21   :  { %v45_v8 = vpack.c.bf16 %v44_v6, %v44_v6 }
  0x22   :  { %p356_p13 = por %p355_p12, %p354_p11 }
  0x23   :  { %253 = vmatpush3.bf16.msra.mxu0 %v298_v2  ;;  %273 = vmatpush3.bf16.msra.mxu1 %v298_v2  ;;  %v46_v10 = vunpack.c.l.bf16 %v45_v8 }
  0x24   :  { %254 = vmatprep.subr.bf16.mxu0 %v379_v0  ;;  %274 = vmatprep.subr.bf16.mxu1 %v379_v0  ;;  %p357_p0 = pnand %p356_p13, %p350_p10 }
  0x25   :  { %v47_v12 = vsub.f32 %v44_v6, %v46_v10 }
  0x27   :  { %255 = vmatpush3.bf16.msra.mxu0 %v299_v3  ;;  %275 = vmatpush3.bf16.msra.mxu1 %v299_v3  ;;  %v48_v14 = vpack.c.bf16 %v47_v12, %v47_v12 }
  0x28   :  { %256 = vmatprep.subr.bf16.mxu0 %v379_v0  ;;  %276 = vmatprep.subr.bf16.mxu1 %v379_v0 }
  0x2b   :  { %257 = vmatpush3.bf16.msra.mxu0 %v300_v4  ;;  %277 = vmatpush3.bf16.msra.mxu1 %v300_v4 }
  0x2c   :  { %258 = vmatprep.subr.bf16.mxu0 %v379_v0  ;;  %278 = vmatprep.subr.bf16.mxu1 %v379_v0 }
  0x2f   :  { %259 = vmatpush3.bf16.msra.mxu0 %v301_v7  ;;  %279 = vmatpush3.bf16.msra.mxu1 %v301_v7 }
  0x30   :  { %260 = vmatprep.subr.bf16.mxu0 %v379_v0  ;;  %280 = vmatprep.subr.bf16.mxu1 %v379_v0 }
  0x33   :  { %261 = vmatpush3.bf16.msra.mxu0 %v302_v9  ;;  %281 = vmatpush3.bf16.msra.mxu1 %v302_v9 }
  0x34   :  { %262 = vmatprep.subr.bf16.mxu0 %v379_v0  ;;  %282 = vmatprep.subr.bf16.mxu1 %v379_v0 }
  0x37   :  { %263 = vmatpush3.bf16.msra.mxu0 %v303_v11  ;;  %283 = vmatpush3.bf16.msra.mxu1 %v303_v11 }
  0x38   :  { %264 = vmatprep.subr.bf16.mxu0 %v379_v0  ;;  %284 = vmatprep.subr.bf16.mxu1 %v379_v0 }
  0x3b   :  { %265 = vmatpush3.bf16.msra.mxu0 %v304_v13  ;;  %285 = vmatpush3.bf16.msra.mxu1 %v304_v13 }
  0x3e   :  { %267 = vmatmul.mubr.bf16.vlgmr.msra.gmra.mxu0 %v48_v14  ;;  %287 = vmatmul.mubr.bf16.vlgmr.msra.gmra.mxu1 %v45_v8 }
  0xfe   :  { %v147_v15 = vpop.f32.mrf.mxu0  ;;  %v187_v16 = vpop.f32.mrf.mxu1 }
  0xff   :  { %v188_v17 = vadd.f32 %v187_v16, %v147_v15 }
 0x100   :  { %v268_v18 = vpop.f32.mrf.mxu0  ;;  %v288_v19 = vpop.f32.mrf.mxu1 }
 0x101   :  { %305 = vrsqrt.f32 %v188_v17  ;;  %vm195_vm1 = vcmp.eq.f32.partialorder %v188_v17, inf  ;;  %v198_v26 = vand.u32 2147483648, %v188_v17  ;;  %vm197_vm2 = vcmp.eq.f32.partialorder %v188_v17, 0.0 }
 0x102   :  { %v150_v20 = vpop.f32.mrf.mxu0  ;;  %v190_v21 = vpop.f32.mrf.mxu1 }
 0x104   :  { %v269_v22 = vpop.f32.mrf.mxu0  ;;  %v289_v23 = vpop.f32.mrf.mxu1 }
 0x10e   :  { %v306_v24 = vpop.eup %305 }
 0x10f   :  { %v194_v25 = vmul.f32 %v306_v24, %v188_v17 }
 0x111   :  { %v196_v27 = vsel %vm195_vm1, %v188_v17, %v194_v25 }
 0x112   :  { %v199_v28 = vsel %vm197_vm2, %v198_v26, %v196_v27 }
 0x113   :  { %v200_v29 = vmul.f32 0.17677669, %v199_v28 }
 0x115   :  { %v201_v30 = vmax.f32 %v200_v29, 1e-05 }
 0x117   :  { %307 = vrcp.f32 %v201_v30 }
 0x124   :  { %v308_v32 = vpop.eup %307 }
 0x125   :  { %v205_v33 = vmul.f32 %v308_v32, %v204_v31 }
 0x127   :  { %v206_v34 = vmul.f32 %v205_v33, %v43_v5 }
 0x129   :  { %207 = vst [vmem:[#allocation8] sm:$0xf] %v206_v34 }
 0x12a   :  { %360 = shalt.err (!%p357_p0)
}
 0x12b   :  { %217 = dma.vmem_to_hbm [thread:$0]  %s215_s25, 64, %s417_s3, [#allocation5]  }
 0x12c   :  { %373 = dma.done.wait [#allocation5], 64  }
 0x12d   :  { %374 = vsyncadd [#allocation5], 4294967232 }
 0x12e   :  { %221 = vsyncpa [#allocation4], 1 }
 0x12f   :  { %222 = vsyncpa [#allocation7], 1 }
 0x130   :  { %223 = vsyncpa [#allocation5], 1 }

</bundles_post_ra>
